<compile_context>
chip_gen: v5e
topology: v5e:2x2
jax: 0.10.0
libtpu: 0.0.40
codegen_flags: <defaults>
</compile_context>

<pallas_src>
import math

import jax
import jax.numpy as jnp
import numpy as np
from jax.experimental import pallas as pl
from jax.experimental.pallas import tpu as pltpu


def _round_up(x, m):
    return ((x + m - 1) // m) * m


# ----------------------------- Pallas kernel ------------------------------ #
def _embed_kernel(hs_ref, mask_ref, w1_ref, b1_ref, w2_ref, b2_ref, out_ref,
                  acc_emb, acc_mask):
    """Stream masked sums over the sequence axis; on the last seq step do
    mean -> Linear -> ReLU -> (Dropout = identity) -> Linear -> L2 normalize."""
    s = pl.program_id(1)

    @pl.when(s == 0)
    def _():
        acc_emb[...] = jnp.zeros_like(acc_emb)
        acc_mask[...] = jnp.zeros_like(acc_mask)

    # hs is stored bf16 in HBM (halved DMA bytes); upcast once, accumulate f32.
    hs = hs_ref[...].astype(jnp.float32)            # (TB, TS, H)
    mask = mask_ref[...]                            # (TB, TS, 1) f32, lane-broadcast
    acc_emb[...] += jnp.sum(hs * mask, axis=1)      # (TB, H)
    acc_mask[...] += jnp.sum(mask, axis=1)          # (TB, 1)

    @pl.when(s == pl.num_programs(1) - 1)
    def _():
        # Clamp so a fully-padded row yields 0 instead of NaN.
        sum_mask = jnp.maximum(acc_mask[...], 1e-9)
        pooled = acc_emb[...] * pl.reciprocal(sum_mask, approx=False)   # (TB, H)

        # Projection head: Linear(H->E), ReLU, Dropout(identity), Linear(E->E)
        h = jnp.dot(pooled, w1_ref[...], preferred_element_type=jnp.float32)
        h = jnp.maximum(h + b1_ref[...], 0.0)
        e = jnp.dot(h, w2_ref[...], preferred_element_type=jnp.float32)
        e = e + b2_ref[...]                                             # (TB, E)

        # F.normalize(p=2, dim=1): x / max(||x||, 1e-12) == x * rsqrt(max(||x||^2, 1e-24))
        sq = jnp.sum(e * e, axis=1, keepdims=True)
        inv_norm = jax.lax.rsqrt(jnp.maximum(sq, 1e-24))
        out_ref[...] = (e * inv_norm).astype(out_ref.dtype)


def pallas_encode(hidden_states, attention_mask, w1, b1, w2, b2, *, tb=None, ts=None):
    """Pooling + projection + L2 normalize for one side of the pair.

    hidden_states: (B, S, H) float (cast to bf16 for HBM storage)
    attention_mask: (B, S)   int/float
    w1: (H, E)  b1: (1, E)  w2: (E, E)  b2: (1, E)
    returns: (B, E) f32, L2-normalized rows
    """
    B, S, H = hidden_states.shape
    E = w1.shape[1]
    assert H % 128 == 0 and E % 128 == 0, "H and E must be multiples of 128 (lane-aligned)"

    # Tile sizes: batch tile multiple of 8 (up to 128 for MXU row fill),
    # sequence tile multiple of 16 (bf16 sublane packing), capped at the array.
    if tb is None:
        tb = min(128, _round_up(B, 8))
    if ts is None:
        ts = min(512, _round_up(S, 16))
    tb = _round_up(tb, 8)
    ts = _round_up(ts, 16)

    Bp, Sp = _round_up(B, tb), _round_up(S, ts)

    hs = hidden_states.astype(jnp.bfloat16)                   # bf16 in HBM
    mask = attention_mask.astype(jnp.float32)[..., None]      # (B, S, 1)
    if (Bp, Sp) != (B, S):
        hs = jnp.pad(hs, ((0, Bp - B), (0, Sp - S), (0, 0)))
        mask = jnp.pad(mask, ((0, Bp - B), (0, Sp - S), (0, 0)))

    grid = (Bp // tb, Sp // ts)   # batch (parallel), sequence reduction last (arbitrary)

    out = pl.pallas_call(
        _embed_kernel,
        out_shape=jax.ShapeDtypeStruct((Bp, E), jnp.float32),
        grid=grid,
        in_specs=[
            pl.BlockSpec((tb, ts, H), lambda b, s: (b, s, 0)),   # hidden states (streamed)
            pl.BlockSpec((tb, ts, 1), lambda b, s: (b, s, 0)),   # mask, lane-broadcastable
            pl.BlockSpec((H, E), lambda b, s: (0, 0)),           # weights stay VMEM resident
            pl.BlockSpec((1, E), lambda b, s: (0, 0)),
            pl.BlockSpec((E, E), lambda b, s: (0, 0)),
            pl.BlockSpec((1, E), lambda b, s: (0, 0)),
        ],
        out_specs=pl.BlockSpec((tb, E), lambda b, s: (b, 0)),    # accumulator across seq axis
        scratch_shapes=[
            pltpu.VMEM((tb, H), jnp.float32),   # running masked sum of embeddings
            pltpu.VMEM((tb, 1), jnp.float32),   # running mask count
        ],
        compiler_params=pltpu.CompilerParams(
            dimension_semantics=("parallel", "arbitrary"),
            vmem_limit_bytes=32 * 1024 * 1024,   # above v5e's 16 MiB default, safe on v7x's 64 MiB
        ),
    )(hs, mask, w1, b1, w2, b2)

    return out[:B]


# ------------------------- parameter construction ------------------------- #
def xavier_uniform(key, fan_in, fan_out):
    bound = math.sqrt(6.0 / (fan_in + fan_out))
    return jax.random.uniform(
        key, (fan_in, fan_out), dtype=jnp.float32, minval=-bound, maxval=bound
    )


class SentenceEmbedderPallas:
    """JAX/Pallas re-implementation of SentenceEmbedder.forward.

    The pretrained backbone is replaced by a deterministic synthetic
    token-embedding lookup (glue); pooling + projection + normalization run
    inside the Pallas kernel.
    """

    def __init__(self, key, vocab_size=64, backbone_dim=128, embedding_dim=256,
                 tb=None, ts=None):
        k_emb, k_w1, k_w2 = jax.random.split(key, 3)
        self.backbone_dim = backbone_dim
        self.embedding_dim = embedding_dim
        self.tb, self.ts = tb, ts
        # synthetic deterministic "backbone": token embedding table
        self.token_table = (
            jax.random.normal(k_emb, (vocab_size, backbone_dim), dtype=jnp.float32) * 0.02
        )
        # projection head (xavier_uniform weights, zero biases — matches _init_weights)
        self.w1 = xavier_uniform(k_w1, backbone_dim, embedding_dim)
        self.b1 = jnp.zeros((1, embedding_dim), dtype=jnp.float32)
        self.w2 = xavier_uniform(k_w2, embedding_dim, embedding_dim)
        self.b2 = jnp.zeros((1, embedding_dim), dtype=jnp.float32)

    def _backbone(self, input_ids):
        # glue: deterministic stand-in for the transformer last_hidden_state
        return jnp.take(self.token_table, input_ids, axis=0)  # (B, S, H)

    def encode(self, input_ids, attention_mask):
        hidden_states = self._backbone(input_ids)              # (B, S, H) f32
        return pallas_encode(
            hidden_states, attention_mask, self.w1, self.b1, self.w2, self.b2,
            tb=self.tb, ts=self.ts,
        )

    def forward(self, input_ids_1, attention_mask_1, input_ids_2, attention_mask_2):
        emb1 = self.encode(input_ids_1, attention_mask_1)
        emb2 = self.encode(input_ids_2, attention_mask_2)
        return emb1, emb2


# ------------------------------ reference ---------------------------------- #
def reference_encode(hidden_states, attention_mask, w1, b1, w2, b2):
    """Pure-JAX reference (matches kernel's bf16 HBM storage of hidden states)."""
    hs = hidden_states.astype(jnp.bfloat16).astype(jnp.float32)
    mask = attention_mask.astype(jnp.float32)
    masked = hs * mask[:, :, None]
    sum_emb = masked.sum(axis=1)
    sum_mask = jnp.maximum(mask.sum(axis=1, keepdims=True), 1e-9)
    pooled = sum_emb / sum_mask
    h = jnp.maximum(pooled @ w1 + b1, 0.0)
    e = h @ w2 + b2
    norm = jnp.maximum(jnp.linalg.norm(e, axis=1, keepdims=True), 1e-12)
    return e / norm


# --------------------------------- main ------------------------------------ #
if __name__ == "__main__":
    key = jax.random.PRNGKey(0)
    k_model, k_ids1, k_ids2 = jax.random.split(key, 3)

    B, S = 16, 32        # batch, seq_len (small; tiled into (2, 2) grid steps)
    VOCAB = 64
    H = 128              # backbone hidden dim (stand-in for MiniLM's 384)
    E = 256              # embedding_dim (stand-in for 384)

    model = SentenceEmbedderPallas(
        k_model, vocab_size=VOCAB, backbone_dim=H, embedding_dim=E, tb=8, ts=16
    )

    input_ids_1 = jax.random.randint(k_ids1, (B, S), 0, VOCAB, dtype=jnp.int32)
    input_ids_2 = jax.random.randint(k_ids2, (B, S), 0, VOCAB, dtype=jnp.int32)
    # masks: first sentence fully valid, second has trailing padding
    attention_mask_1 = jnp.ones((B, S), dtype=jnp.int32)
    attention_mask_2 = jnp.concatenate(
        [jnp.ones((B, S - 6), dtype=jnp.int32), jnp.zeros((B, 6), dtype=jnp.int32)],
        axis=1,
    )

    emb1, emb2 = model.forward(
        input_ids_1, attention_mask_1, input_ids_2, attention_mask_2
    )
    emb1 = jax.block_until_ready(emb1)
    emb2 = jax.block_until_ready(emb2)

    # shape + L2-normalization sanity
    assert emb1.shape == (B, E) and emb2.shape == (B, E)
    assert jnp.allclose(jnp.linalg.norm(emb1, axis=1), 1.0, atol=1e-5)
    assert jnp.allclose(jnp.linalg.norm(emb2, axis=1), 1.0, atol=1e-5)

    # numerical check against pure-JAX reference
    hs1 = model._backbone(input_ids_1)
    hs2 = model._backbone(input_ids_2)
    ref1 = reference_encode(hs1, attention_mask_1, model.w1, model.b1, model.w2, model.b2)
    ref2 = reference_encode(hs2, attention_mask_2, model.w1, model.b1, model.w2, model.b2)
    np.testing.assert_allclose(np.asarray(emb1), np.asarray(ref1), atol=5e-5, rtol=5e-5)
    np.testing.assert_allclose(np.asarray(emb2), np.asarray(ref2), atol=5e-5, rtol=5e-5)

    print("KERNEL_OK")
</pallas_src>

<mosaic_0001>
module attributes {stable_mosaic.version = 11 : i64} {
  func.func @_embed_kernel(%arg0: i32, %arg1: i32, %arg2: memref<8x16x128xbf16, #tpu.memory_space<vmem>>, %arg3: memref<8x16x1xf32, #tpu.memory_space<vmem>>, %arg4: memref<128x256xf32, #tpu.memory_space<vmem>>, %arg5: memref<1x256xf32, #tpu.memory_space<vmem>>, %arg6: memref<256x256xf32, #tpu.memory_space<vmem>>, %arg7: memref<1x256xf32, #tpu.memory_space<vmem>>, %arg8: memref<8x256xf32, #tpu.memory_space<vmem>>, %arg9: memref<8x128xf32, #tpu.memory_space<vmem>>, %arg10: memref<8x1xf32, #tpu.memory_space<vmem>>) attributes {dimension_semantics = [#tpu.dimension_semantics<parallel>, #tpu.dimension_semantics<arbitrary>], iteration_bounds = array<i64: 2, 2>, scalar_prefetch = 0 : i64, scratch_operands = 2 : i64, tpu.core_type = #tpu.core_type<tc>, window_params = [{transform_indices = @transform_0, window_bounds = array<i64: 8, 16, 128>}, {transform_indices = @transform_1, window_bounds = array<i64: 8, 16, 1>}, {pipeline_mode = #tpu.pipeline_mode<synchronous>, transform_indices = @transform_2, window_bounds = array<i64: 128, 256>}, {pipeline_mode = #tpu.pipeline_mode<synchronous>, transform_indices = @transform_3, window_bounds = array<i64: 1, 256>}, {pipeline_mode = #tpu.pipeline_mode<synchronous>, transform_indices = @transform_4, window_bounds = array<i64: 256, 256>}, {pipeline_mode = #tpu.pipeline_mode<synchronous>, transform_indices = @transform_5, window_bounds = array<i64: 1, 256>}, {transform_indices = @transform_6, window_bounds = array<i64: 8, 256>}]} {
    %c0_i32 = arith.constant 0 : i32
    %0 = arith.cmpi eq, %arg1, %c0_i32 : i32
    %1 = arith.extui %0 : i1 to i32
    %c0_i32_0 = arith.constant 0 : i32
    %2 = arith.cmpi ne, %1, %c0_i32_0 : i32
    scf.if %2 {
      %cst_16 = arith.constant 0.000000e+00 : f32
      %19 = vector.broadcast %cst_16 : f32 to vector<8x128xf32>
      %c0_17 = arith.constant 0 : index
      %c0_18 = arith.constant 0 : index
      %20 = vector.load %arg9[%c0_17, %c0_18] : memref<8x128xf32, #tpu.memory_space<vmem>>, vector<8x128xf32>
      tpu.vector_store %arg9[%c0_17, %c0_18], %19 {strides = array<i32>} : memref<8x128xf32, #tpu.memory_space<vmem>>, vector<8x128xf32>,
      %cst_19 = arith.constant 0.000000e+00 : f32
      %21 = vector.broadcast %cst_19 : f32 to vector<8x1xf32>
      %c0_20 = arith.constant 0 : index
      %c0_21 = arith.constant 0 : index
      %22 = vector.load %arg10[%c0_20, %c0_21] : memref<8x1xf32, #tpu.memory_space<vmem>>, vector<8x1xf32>
      tpu.vector_store %arg10[%c0_20, %c0_21], %21 {strides = array<i32>} : memref<8x1xf32, #tpu.memory_space<vmem>>, vector<8x1xf32>,
    } else {
    }
    %c0 = arith.constant 0 : index
    %c0_1 = arith.constant 0 : index
    %c0_2 = arith.constant 0 : index
    %3 = vector.load %arg2[%c0, %c0_1, %c0_2] : memref<8x16x128xbf16, #tpu.memory_space<vmem>>, vector<8x16x128xbf16>
    %4 = arith.extf %3 : vector<8x16x128xbf16> to vector<8x16x128xf32>
    %c0_3 = arith.constant 0 : index
    %c0_4 = arith.constant 0 : index
    %c0_5 = arith.constant 0 : index
    %5 = vector.load %arg3[%c0_3, %c0_4, %c0_5] : memref<8x16x1xf32, #tpu.memory_space<vmem>>, vector<8x16x1xf32>
    %c0_6 = arith.constant 0 : index
    %c0_7 = arith.constant 0 : index
    %6 = vector.load %arg9[%c0_6, %c0_7] : memref<8x128xf32, #tpu.memory_space<vmem>>, vector<8x128xf32>
    %7 = vector.broadcast %5 : vector<8x16x1xf32> to vector<8x16x128xf32>
    %8 = arith.mulf %4, %7 : vector<8x16x128xf32>
    %cst = arith.constant dense<0.000000e+00> : vector<8x128xf32>
    %9 = vector.multi_reduction <add>, %8, %cst [1] : vector<8x16x128xf32> to vector<8x128xf32>
    %10 = arith.addf %6, %9 : vector<8x128xf32>
    %c0_8 = arith.constant 0 : index
    %c0_9 = arith.constant 0 : index
    %11 = vector.load %arg9[%c0_8, %c0_9] : memref<8x128xf32, #tpu.memory_space<vmem>>, vector<8x128xf32>
    tpu.vector_store %arg9[%c0_8, %c0_9], %10 {strides = array<i32>} : memref<8x128xf32, #tpu.memory_space<vmem>>, vector<8x128xf32>,
    %c0_10 = arith.constant 0 : index
    %c0_11 = arith.constant 0 : index
    %12 = vector.load %arg10[%c0_10, %c0_11] : memref<8x1xf32, #tpu.memory_space<vmem>>, vector<8x1xf32>
    %cst_12 = arith.constant dense<0.000000e+00> : vector<8x1xf32>
    %13 = vector.multi_reduction <add>, %5, %cst_12 [1] : vector<8x16x1xf32> to vector<8x1xf32>
    %14 = arith.addf %12, %13 : vector<8x1xf32>
    %c0_13 = arith.constant 0 : index
    %c0_14 = arith.constant 0 : index
    %15 = vector.load %arg10[%c0_13, %c0_14] : memref<8x1xf32, #tpu.memory_space<vmem>>, vector<8x1xf32>
    tpu.vector_store %arg10[%c0_13, %c0_14], %14 {strides = array<i32>} : memref<8x1xf32, #tpu.memory_space<vmem>>, vector<8x1xf32>,
    %c1_i32 = arith.constant 1 : i32
    %16 = arith.cmpi eq, %arg1, %c1_i32 : i32
    %17 = arith.extui %16 : i1 to i32
    %c0_i32_15 = arith.constant 0 : i32
    %18 = arith.cmpi ne, %17, %c0_i32_15 : i32
    scf.if %18 {
      %c0_16 = arith.constant 0 : index
      %c0_17 = arith.constant 0 : index
      %19 = vector.load %arg10[%c0_16, %c0_17] : memref<8x1xf32, #tpu.memory_space<vmem>>, vector<8x1xf32>
      %cst_18 = arith.constant 9.99999971E-10 : f32
      %20 = vector.broadcast %cst_18 : f32 to vector<8x1xf32>
      %21 = arith.maximumf %19, %20 : vector<8x1xf32>
      %c0_19 = arith.constant 0 : index
      %c0_20 = arith.constant 0 : index
      %22 = vector.load %arg9[%c0_19, %c0_20] : memref<8x128xf32, #tpu.memory_space<vmem>>, vector<8x128xf32>
      %23 = tpu.reciprocal %21 : vector<8x1xf32> -> vector<8x1xf32>
      %24 = vector.broadcast %23 : vector<8x1xf32> to vector<8x128xf32>
      %25 = arith.mulf %22, %24 : vector<8x128xf32>
      %c0_21 = arith.constant 0 : index
      %c0_22 = arith.constant 0 : index
      %26 = vector.load %arg4[%c0_21, %c0_22] : memref<128x256xf32, #tpu.memory_space<vmem>>, vector<128x256xf32>
      %cst_23 = arith.constant dense<0.000000e+00> : vector<8x256xf32>
      %27 = tpu.matmul %25, %26, %cst_23 {dimension_numbers = #tpu.dot_dimension_numbers<[1], [0], [0], [1], [0, 0, 1, 1], [], []>} : vector<8x128xf32>, vector<128x256xf32>, vector<8x256xf32> -> vector<8x256xf32>
      %c0_24 = arith.constant 0 : index
      %c0_25 = arith.constant 0 : index
      %28 = vector.load %arg5[%c0_24, %c0_25] : memref<1x256xf32, #tpu.memory_space<vmem>>, vector<1x256xf32>
      %29 = vector.broadcast %28 : vector<1x256xf32> to vector<8x256xf32>
      %30 = arith.addf %27, %29 : vector<8x256xf32>
      %cst_26 = arith.constant 0.000000e+00 : f32
      %31 = vector.broadcast %cst_26 : f32 to vector<8x256xf32>
      %32 = arith.maximumf %30, %31 : vector<8x256xf32>
      %c0_27 = arith.constant 0 : index
      %c0_28 = arith.constant 0 : index
      %33 = vector.load %arg6[%c0_27, %c0_28] : memref<256x256xf32, #tpu.memory_space<vmem>>, vector<256x256xf32>
      %cst_29 = arith.constant dense<0.000000e+00> : vector<8x256xf32>
      %34 = tpu.matmul %32, %33, %cst_29 {dimension_numbers = #tpu.dot_dimension_numbers<[1], [0], [0], [1], [0, 0, 1, 1], [], []>} : vector<8x256xf32>, vector<256x256xf32>, vector<8x256xf32> -> vector<8x256xf32>
      %c0_30 = arith.constant 0 : index
      %c0_31 = arith.constant 0 : index
      %35 = vector.load %arg7[%c0_30, %c0_31] : memref<1x256xf32, #tpu.memory_space<vmem>>, vector<1x256xf32>
      %36 = vector.broadcast %35 : vector<1x256xf32> to vector<8x256xf32>
      %37 = arith.addf %34, %36 : vector<8x256xf32>
      %38 = arith.mulf %37, %37 : vector<8x256xf32>
      %cst_32 = arith.constant dense<0.000000e+00> : vector<8xf32>
      %39 = vector.multi_reduction <add>, %38, %cst_32 [1] : vector<8x256xf32> to vector<8xf32>
      %40 = vector.shape_cast %39 : vector<8xf32> to vector<8x1xf32>
      %cst_33 = arith.constant 1.000000e-24 : f32
      %41 = vector.broadcast %cst_33 : f32 to vector<8x1xf32>
      %42 = arith.maximumf %40, %41 : vector<8x1xf32>
      %43 = math.rsqrt %42 : vector<8x1xf32>
      %44 = vector.broadcast %43 : vector<8x1xf32> to vector<8x256xf32>
      %45 = arith.mulf %37, %44 : vector<8x256xf32>
      %c0_34 = arith.constant 0 : index
      %c0_35 = arith.constant 0 : index
      %46 = vector.load %arg8[%c0_34, %c0_35] : memref<8x256xf32, #tpu.memory_space<vmem>>, vector<8x256xf32>
      tpu.vector_store %arg8[%c0_34, %c0_35], %45 {strides = array<i32>} : memref<8x256xf32, #tpu.memory_space<vmem>>, vector<8x256xf32>,
    } else {
    }
    return
  }
  func.func @transform_0(%arg0: i32, %arg1: i32) -> (i32, i32, i32) {
    %c0_i32 = arith.constant 0 : i32
    %c0_i32_0 = arith.constant 0 : i32
    return %arg0, %arg1, %c0_i32 : i32, i32, i32
  }
  func.func @transform_1(%arg0: i32, %arg1: i32) -> (i32, i32, i32) {
    %c0_i32 = arith.constant 0 : i32
    %c0_i32_0 = arith.constant 0 : i32
    return %arg0, %arg1, %c0_i32 : i32, i32, i32
  }
  func.func @transform_2(%arg0: i32, %arg1: i32) -> (i32, i32) {
    %c0_i32 = arith.constant 0 : i32
    %c0_i32_0 = arith.constant 0 : i32
    %c0_i32_1 = arith.constant 0 : i32
    return %c0_i32, %c0_i32_0 : i32, i32
  }
  func.func @transform_3(%arg0: i32, %arg1: i32) -> (i32, i32) {
    %c0_i32 = arith.constant 0 : i32
    %c0_i32_0 = arith.constant 0 : i32
    %c0_i32_1 = arith.constant 0 : i32
    return %c0_i32, %c0_i32_0 : i32, i32
  }
  func.func @transform_4(%arg0: i32, %arg1: i32) -> (i32, i32) {
    %c0_i32 = arith.constant 0 : i32
    %c0_i32_0 = arith.constant 0 : i32
    %c0_i32_1 = arith.constant 0 : i32
    return %c0_i32, %c0_i32_0 : i32, i32
  }
  func.func @transform_5(%arg0: i32, %arg1: i32) -> (i32, i32) {
    %c0_i32 = arith.constant 0 : i32
    %c0_i32_0 = arith.constant 0 : i32
    %c0_i32_1 = arith.constant 0 : i32
    return %c0_i32, %c0_i32_0 : i32, i32
  }
  func.func @transform_6(%arg0: i32, %arg1: i32) -> (i32, i32) {
    %c0_i32 = arith.constant 0 : i32
    %c0_i32_0 = arith.constant 0 : i32
    return %arg0, %c0_i32 : i32, i32
  }
}

</mosaic_0001>

<bundles_post_ra>
// kernel: tpu_custom_call.1
= control target key start
LH: loop header
LB: loop body
LE: loop exit
PB: predicated region body
PF: predicated region fallthrough
CT: control target
= control target key end

     0   :  { %s2135_s0 = inlined_call_operand.hbm [shape: bf16[16,32,128], index: 0, kind: input, shape index: {}]   ;;  %s2136_s1 = inlined_call_operand.vmem [shape: f32[16,32,1], index: 1, kind: input, shape index: {}]   ;;  %s2137_s2 = inlined_call_operand.hbm [shape: f32[128,256], index: 2, kind: input, shape index: {}]   ;;  %s2138_s3 = inlined_call_operand.vmem [shape: f32[1,256], index: 3, kind: input, shape index: {}]   ;;  %s2139_s4 = inlined_call_operand.vmem [shape: f32[256,256], index: 4, kind: input, shape index: {}]   ;;  %s2140_s5 = inlined_call_operand.vmem [shape: f32[1,256], index: 5, kind: input, shape index: {}]   ;;  %s2141_s6 = inlined_call_operand.hbm [shape: f32[16,256], index: 6, kind: output, shape index: {}]  }
   0x1   :  { %2149 = sst [smem:[#allocation25_spill]] %s2135_s0 }
   0x2   :  { %2150 = sst [smem:[#allocation26_spill]] %s2137_s2 }
   0x3   :  { %2151 = sst [smem:[#allocation27_spill]] %s2141_s6 }
   0x4   :  { %11 = vsyncpa [#allocation5], 0 }
   0x5   :  { %13 = vsyncpa [#allocation5 + $0x1], 0 }
   0x6   :  { %14 = vsyncpa [#allocation9], 0 }
   0x7   :  { %15 = vsyncpa [#allocation6], 0 }
   0x8   :  { %17 = vsyncpa [#allocation6 + $0x1], 0  ;;  %s1600_s21 = smov 0   ;;  %s1602_s22 = smov 0  }
   0x9   :  { %s1604_s23 = smov 0   ;;  %s1606_s24 = smov 0  }
   0xa   :  { %s1608_s25 = smov 0   ;;  %s1610_s26 = smov 0  }
   0xb   :  { %s1612_s27 = smov 0   ;;  %s1614_s28 = smov 0  }
   0xc   :  { %s1616_s29 = smov 0   ;;  %s1618_s30 = smov 0  }
   0xd   :  { %s1620_s7 = smov 0  }
   0xe LB: > { %2152 = sst [smem:[#allocation17_spill]] %s1519_s23  ;;  %s1190_s8 = sadd.s32 4294967295, %s1551_s7   ;;  %s1551_s7 = sphi %s1620_s7, %s23_s7   ;;  %s1547_s30 = sphi %s1618_s30, %s2177_s30   ;;  %s1543_s29 = sphi %s1616_s29, %s2182_s29   ;;  %s1539_s28 = sphi %s1614_s28, %s2175_s28   ;;  %s1535_s27 = sphi %s1612_s27, %s2174_s27   ;;  %s1531_s26 = sphi %s1610_s26, %s2173_s26   ;;  %s1527_s25 = sphi %s1608_s25, %s2181_s25   ;;  %s1523_s24 = sphi %s1606_s24, %s2180_s24   ;;  %s1519_s23 = sphi %s1604_s23, %s2171_s23   ;;  %s1515_s22 = sphi %s1602_s22, %s2179_s22   ;;  %s1511_s21 = sphi %s1600_s21, %s2178_s21  }
   0xf   : > { %2153 = sst [smem:[#allocation18_spill]] %s1531_s26  ;;  %s1191_s9 = sadd.s32 4294967294, %s1551_s7  }
  0x10   : > { %2154 = sst [smem:[#allocation19_spill]] %s1543_s29  ;;  %s32_s10 = sadd.s32 1, %s1543_s29 }
  0x11   : > { %2155 = sst [smem:[#allocation20_spill]] %s1547_s30  ;;  %s35_s11 = sadd.s32 1, %s1547_s30 }
  0x12   : > { %p33_p0 = scmp.ge.s32.totalorder %s32_s10, 2  ;;  %s44_s12 = sadd.s32 1, %s1531_s26 }
  0x13   : > { %p51_p1 = scmp.ne.s32.totalorder %s1531_s26, %s1527_s25  ;;  %p52_p2 = scmp.eq.s32.totalorder %s1551_s7, 0 }
  0x14   : > { %s2184_s10 = smov (%p33_p0, %s32_s10), 0  ;;  %s2186_s11 = smov (!%p33_p0, %s35_s11), %s1547_s30 }
  0x15   : > { %2156 = sst [smem:[#allocation21_spill]] %s2184_s10  ;;  %s40_s13 = ssub.s32 %s1543_s29, %s2184_s10 }
  0x16   : > { %p1666_p3 = por %p52_p2, %p51_p1  ;;  %p37_p4 = scmp.ge.s32.totalorder %s2186_s11, 2 }
  0x17   : > { %p57_p5 = scmp.ne.s32.totalorder %s1527_s25, %s1523_s24  ;;  %p1671_p6 = scmp.eq.s32.totalorder %s1190_s8, 0 }
  0x18   : > { %s182_s16 = sadd.s32 1, %s1519_s23  ;;  %s2188_s11 = smov (%p37_p4, %s2186_s11), 0 }
  0x19   : > { %2159 = sst [smem:[#allocation22_spill]] %s2188_s11  ;;  %p1680_p7 = por %p1671_p6, %p57_p5 }
  0x1a   : > { %p192_p8 = scmp.ne.s32.totalorder %s1519_s23, %s1515_s22  ;;  %s39_s18 = ssub.s32 %s1547_s30, %s2188_s11 }
  0x1b   : > { %p193_p9 = scmp.eq.s32.totalorder %s1190_s8, 3  ;;  %s41_s19 = sor.u32 %s40_s13, %s39_s18 }
  0x1c   : > { %p180_p10 = scmp.eq.s32.totalorder %s39_s18, 0  ;;  %p42_p11 = scmp.eq.s32.totalorder %s41_s19, 0 }
  0x1d   : > { %p1688_p12 = por %p193_p9, %p192_p8  ;;  %p198_p13 = scmp.ne.s32.totalorder %s1515_s22, %s1511_s21 }
  0x1e   : > { %s1693_s24 = scalar_select %p180_p10, %s1519_s23, %s182_s16  }
  0x1f   : > { %s1696_s10 = scalar_select %p42_p11, %s1531_s26, %s44_s12  }
  0x20   : > { %2162 = sst [smem:[#allocation23_spill]] %s1693_s24  ;;  %p199_p0 = scmp.eq.s32.totalorder %s1191_s9, 3 }
  0x21   : > { %2163 = sst [smem:[#allocation24_spill]] %s1696_s10  ;;  %p1192_p1 = scmp.ge.s32.totalorder %s1551_s7, 1 }
  0x22   : > { %p206_p2 = scmp.lt.s32.totalorder %s1551_s7, 5  ;;  %p1702_p4 = por %p199_p0, %p198_p13 }
  0x23   : > { %s2166_s2 = sld [smem:[#allocation26_spill]]  ;;  %s1553_s12 = smov [#allocation8]  }
  0x24   : > { %p1706_p5 = pnand %p1192_p1, %p206_p2  ;;  %s219_s9 = sshll.u32 %s1553_s12, 4  ;;  %s220_s9 = int_to_ptr.vmem [resolvable:$true] %s219_s9 }
  0x25   : > { %s1554_s19 = smov 256   ;;  %s1555_s11 = smov 16  }
  0x26   : > { %p1276_p8 = pneg %p1706_p5  ;;  %p1194_p10 = scmp.ge.s32.totalorder %s1551_s7, 4 }
  0x28   : > { %p1277_p9 = pnand %p1276_p8, %p1671_p6  ;;  %238 = sbr.rel (%p1194_p10) target bundleno = 80 (0x50), region = 32 }
  0x29   : > { %s217_s16 = sshll.u32 %s2166_s2, 4  ;;  %s218_s16 = int_to_ptr.hbm [resolvable:$true] %s217_s16 }
  0x2a   : > { %1279 = dma.hbm_to_vmem [thread:$0]  (!%p1277_p9), %s218_s16, 4096, %s220_s9, [#allocation9], %s1554_s19, %s1554_s19, %s1555_s11  }
  0x2d   : > { %s1719_s13 = sand.u32 1, %s1531_s26   ;;  %s1197_s18 = sshll.u32 %s1543_s29, 1 }
  0x2e   : > { %s1195_s12 = sshll.u32 %s1719_s13, 6  ;;  %s1219_s2 = sshll.u32 %s1547_s30, 5 }
  0x2f   : > { %s1724_s10 = sadd.s32 %s1219_s2, %s1197_s18  ;;  %s246_s16 = scalar_lea.vmem [#allocation4], %s1195_s12 }
  0x30   : > { %s1199_s11 = sshll.u32 %s1724_s10, 2  ;;  %s269_s9 = sshll.u32 %s246_s16, 4  ;;  %s270_s9 = int_to_ptr.vmem [resolvable:$true] %s269_s9 }
  0x31   : > { %s2167_s0 = sld [smem:[#allocation25_spill]]  ;;  %s1556_s29 = smov 256  }
  0x32   : > { %s1263_s26 = scalar_select %p1666_p3, [#allocation0], [#allocation13] }
  0x33   : > { %1264 = sst [smem:[#allocation12]] (%p1666_p3), %s1556_s29  ;;  %s1557_s30 = smov 128  }
  0x34   : > { %s259_s2 = sld [smem:[%s1263_s26]]   ;;  %s1558_s12 = smov 2  }
  0x35   : > { %1265 = sst [smem:[#allocation12 + $0x1]] (%p1666_p3), %s1557_s30  ;;  %s1559_s24 = smov 64  }
  0x36   : > { %1266 = sst [smem:[#allocation12 + $0x2]] (%p1666_p3), %s1558_s12  ;;  %s1560_s16 = smov 4  }
  0x37   : > { %s254_s23 = scalar_lea.hbm %s2167_s0, %s1199_s11  ;;  %1267 = sst [smem:[#allocation12 + $0x3]] (%p1666_p3), %s1559_s24 }
  0x38   : > { %s267_s18 = sshll.u32 %s254_s23, 4  ;;  %1268 = sst [smem:[#allocation12 + $0x4]] (%p1666_p3), %s1559_s24  ;;  %s268_s18 = int_to_ptr.hbm [resolvable:$true] %s267_s18 }
  0x39   : > { %1269 = sst [smem:[#allocation12 + $0x5]] (%p1666_p3), %s1560_s16  ;;  %s243_s26 = scalar_lea.sflag [#allocation5], %s1719_s13 }
  0x3a   : > { %s1200_s11 = sshll.u32 %s259_s2, 26  ;;  %s1561_s19 = smov [#allocation11]  }
  0x3b   : > { %s1201_s29 = sadd.s32 134217728, %s1200_s11  ;;  %291 = sbr.rel (!%p1666_p3) target bundleno = 80 (0x50), region = 40 }
  0x3c   : > { %1270 = dma.general (%p1666_p3), %s268_s18, 1024, %s270_s9, %s243_s26, %s1561_s19, [#allocation12], %s1201_s29, 0  }
  0x3d   : > { %s1202_s23 = sshll.u32 (%p1666_p3), %s1719_s13, 7  ;;  %s1206_s30 = sshll.u32 (%p1666_p3), %s1724_s10, 3 }
  0x3e   : > { %s1754_s24 = scalar_lea.vmem (%p1666_p3), %s2136_s1, %s1206_s30  ;;  %s295_s14 = scalar_lea.vmem (%p1666_p3), [#allocation7], %s1202_s23 }
  0x3f   : > { %v360_v0 = vld [vmem:[%s1754_s24] sm:$0xff] (%p1666_p3)  ;;  %v362_v1 = vld [vmem:[%s1754_s24 + $0x8] sm:$0xff] (%p1666_p3) }
  0x40   : > { %v364_v2 = vld [vmem:[%s1754_s24 + $0x20] sm:$0xff]  ;;  %361 = vst [vmem:[%s295_s14] sm:$0xff] %v360_v0  ;;  %v366_v3 = vld [vmem:[%s1754_s24 + $0x28] sm:$0xff] }
  0x41   : > { %363 = vst [vmem:[%s295_s14 + $0x8] sm:$0xff] %v362_v1  ;;  %v368_v4 = vld [vmem:[%s1754_s24 + $0x40] sm:$0xff]  ;;  %v370_v5 = vld [vmem:[%s1754_s24 + $0x48] sm:$0xff] }
  0x42   : > { %365 = vst [vmem:[%s295_s14 + $0x10] sm:$0xff] %v364_v2  ;;  %v372_v6 = vld [vmem:[%s1754_s24 + $0x60] sm:$0xff]  ;;  %v374_v7 = vld [vmem:[%s1754_s24 + $0x68] sm:$0xff] }
  0x43   : > { %367 = vst [vmem:[%s295_s14 + $0x18] sm:$0xff] %v366_v3  ;;  %v376_v8 = vld [vmem:[%s1754_s24 + $0x80] sm:$0xff]  ;;  %v378_v9 = vld [vmem:[%s1754_s24 + $0x88] sm:$0xff] }
  0x44   : > { %369 = vst [vmem:[%s295_s14 + $0x20] sm:$0xff] %v368_v4  ;;  %v380_v10 = vld [vmem:[%s1754_s24 + $0xa0] sm:$0xff]  ;;  %v382_v11 = vld [vmem:[%s1754_s24 + $0xa8] sm:$0xff] }
  0x45   : > { %371 = vst [vmem:[%s295_s14 + $0x28] sm:$0xff] %v370_v5  ;;  %v384_v12 = vld [vmem:[%s1754_s24 + $0xc0] sm:$0xff]  ;;  %v386_v13 = vld [vmem:[%s1754_s24 + $0xc8] sm:$0xff] }
  0x46   : > { %373 = vst [vmem:[%s295_s14 + $0x30] sm:$0xff] %v372_v6  ;;  %v388_v14 = vld [vmem:[%s1754_s24 + $0xe0] sm:$0xff]  ;;  %v390_v15 = vld [vmem:[%s1754_s24 + $0xe8] sm:$0xff] }
  0x47   : > { %375 = vst [vmem:[%s295_s14 + $0x38] sm:$0xff] %v374_v7 }
  0x48   : > { %377 = vst [vmem:[%s295_s14 + $0x40] sm:$0xff] %v376_v8 }
  0x49   : > { %379 = vst [vmem:[%s295_s14 + $0x48] sm:$0xff] %v378_v9 }
  0x4a   : > { %381 = vst [vmem:[%s295_s14 + $0x50] sm:$0xff] %v380_v10 }
  0x4b   : > { %383 = vst [vmem:[%s295_s14 + $0x58] sm:$0xff] %v382_v11 }
  0x4c   : > { %385 = vst [vmem:[%s295_s14 + $0x60] sm:$0xff] %v384_v12 }
  0x4d   : > { %387 = vst [vmem:[%s295_s14 + $0x68] sm:$0xff] %v386_v13 }
  0x4e   : > { %389 = vst [vmem:[%s295_s14 + $0x70] sm:$0xff] %v388_v14 }
  0x4f   : > { %391 = vst [vmem:[%s295_s14 + $0x78] sm:$0xff] %v390_v15 }
  0x50 PF: > { %400 = sbr.rel (%p1706_p5) target bundleno = 844 (0x34c), region = 78  ;;  %s402_s0 = sand.u32 (!%p1706_p5), 1, %s1527_s25  }
  0x51   : > { %s1208_s10 = sshll.u32 (!%p1706_p5), %s402_s0, 6  ;;  %s403_s13 = scalar_lea.sflag (!%p1706_p5), [#allocation5], %s402_s0 }
  0x52   : > { %s1775_s9 = scalar_lea.vmem (!%p1706_p5), [#allocation4], %s1208_s10 }
  0x55   : > { %1498 = dma.done.wait (%p1680_p7), %s403_s13, 1024  }
  0x56   : > { %1500 = vsyncadd (%p1680_p7), %s403_s13, 4294966272  ;;  %s1209_s2 = sshll.u32 %s402_s0, 7 }
  0x57   : > { %s1781_s18 = scalar_lea.vmem [#allocation7], %s1209_s2 }
  0x58   : > { %1502 = dma.done.wait (%p1671_p6), [#allocation9], 4096  }
  0x59   : > { %1504 = vsyncadd (%p1671_p6), [#allocation9], 4294963200  ;;  %s449_s8 = sand.u32 1, %s1515_s22   ;;  %p1212_p3 = scmp.ne.s32.totalorder %s1535_s27, 0 }
  0x5a   : > { %s1211_s11 = sshll.u32 %s449_s8, 4 }
  0x5b   : > { %s1790_s16 = scalar_lea.vmem [#allocation10], %s1211_s11  ;;  %459 = sbr.rel (%p1212_p3) target bundleno = 99 (0x63), region = 94 }
  0x60   : > { %vm461_vm0 = vcmask 7168   ;;  %v1562_v16 = vmov 0.0  }
  0x61   : > { %460 = vst [vmem:[#allocation2] sm:$0xff] %v1562_v16 }
  0x62   : > { %462 = vst.msk [vmem:[#allocation3] sm:$0xff] %vm461_vm0, %v1562_v16 }
  0x63 PF: > { %v499_v17 = vld [vmem:[%s1781_s18 + $0x20] sm:$0xff]  ;;  %vm690_vm1 = vcmask 7168   ;;  %v497_v18 = vld [vmem:[%s1781_s18 + $0x10] sm:$0xff]  ;;  %v1563_v20 = vmov 0   ;;  %v500_v24 = vld [vmem:[%s1781_s18 + $0x28] sm:$0xff]  ;;  %vm672_vm2 = vcmask 1041409  }
  0x64   : > { %v495_v19 = vld [vmem:[%s1781_s18] sm:$0xff]  ;;  %1389 = vset.pattern.permute.xlu2 %v1563_v20  ;;  %1388 = vset.pattern.permute.xlu1 %v1563_v20  ;;  %v709_v21 = vsel %vm690_vm1, %v499_v17, 0.0  ;;  %v700_v22 = vsel %vm690_vm1, %v497_v18, 0.0  ;;  %v498_v25 = vld [vmem:[%s1781_s18 + $0x18] sm:$0xff]  ;;  %v496_v26 = vld [vmem:[%s1781_s18 + $0x8] sm:$0xff]  ;;  %v710_v27 = vsel %vm690_vm1, %v500_v24, 0.0 }
  0x65   : > { %v691_v23 = vsel %vm690_vm1, %v495_v19, 0.0  ;;  %1387 = vset.pattern.permute.xlu0 %v1563_v20  ;;  %534 = vperm.xlu2 %1389, %v499_v17   ;;  %v701_v28 = vsel %vm690_vm1, %v498_v25, 0.0  ;;  %v692_v29 = vsel %vm690_vm1, %v496_v26, 0.0  ;;  %v1806_v30 = vld [vmem:[%s1781_s18 + $0x40] sm:$0xff]  ;;  %v711_v31 = vadd.f32 %v710_v27, %v709_v21  ;;  %v1809_v34 = vld [vmem:[%s1781_s18 + $0x38] sm:$0xff]  ;;  %v1812_v35 = vld [vmem:[%s1781_s18 + $0x30] sm:$0xff] }
  0x66   : > { %524 = vperm.xlu1 %1388, %v497_v18   ;;  %514 = vperm.xlu0 %1387, %v495_v19   ;;  %v702_v32 = vadd.f32 %v701_v28, %v700_v22  ;;  %v693_v33 = vadd.f32 %v692_v29, %v691_v23  ;;  %v1815_v36 = vld [vmem:[%s1781_s18 + $0x58] sm:$0xff]  ;;  %v727_v37 = vsel %vm690_vm1, %v1806_v30, 0.0  ;;  %v719_v38 = vsel %vm690_vm1, %v1809_v34, 0.0  ;;  %v1826_v45 = vld [vmem:[%s1781_s18 + $0x50] sm:$0xff]  ;;  %v1829_v46 = vld [vmem:[%s1781_s18 + $0x48] sm:$0xff]  ;;  %p1213_p6 = scmp.ne.s32.totalorder %s1535_s27, 1 }
  0x67   : > { %v718_v39 = vsel %vm690_vm1, %v1812_v35, 0.0  ;;  %v737_v40 = vsel %vm690_vm1, %v1815_v36, 0.0  ;;  %v712_v41 = vrot.slane %v711_v31, 4  ;;  %v736_v47 = vsel %vm690_vm1, %v1826_v45, 0.0  ;;  %v1836_v53 = vld [vmem:[%s1781_s18 + $0x68] sm:$0xff]  ;;  %v1841_v61 = vld [vmem:[%s1781_s18 + $0x60] sm:$0xff] }
  0x68   : > { %v703_v42 = vrot.slane %v702_v32, 4  ;;  %v694_v43 = vrot.slane %v693_v33, 4  ;;  %v720_v44 = vadd.f32 %v719_v38, %v718_v39  ;;  %v728_v48 = vsel %vm690_vm1, %v1829_v46, 0.0  ;;  %v509_v5 = vld [vmem:[%s1781_s18 + $0x70] sm:$0xff]  ;;  %v510_v14 = vld [vmem:[%s1781_s18 + $0x78] sm:$0xff] }
  0x69   : > { %v713_v49 = vadd.f32 %v712_v41, %v711_v31  ;;  %v738_v54 = vadd.f32 %v737_v40, %v736_v47  ;;  %v729_v55 = vadd.f32 %v728_v48, %v727_v37  ;;  %v746_v56 = vsel %vm690_vm1, %v1836_v53, 0.0 }
  0x6a   : > { %v704_v50 = vadd.f32 %v703_v42, %v702_v32  ;;  %v695_v51 = vadd.f32 %v694_v43, %v693_v33  ;;  %v721_v52 = vrot.slane %v720_v44, 4  ;;  %v745_v0 = vsel %vm690_vm1, %v1841_v61, 0.0 }
  0x6b   : > { %v714_v57 = vrot.slane %v713_v49, 2  ;;  %v739_v62 = vrot.slane %v738_v54, 4  ;;  %v730_v63 = vrot.slane %v729_v55, 4  ;;  %v754_v8 = vsel %vm690_vm1, %v509_v5, 0.0 }
  0x6c   : > { %v705_v58 = vrot.slane %v704_v50, 2  ;;  %v696_v59 = vrot.slane %v695_v51, 2  ;;  %v722_v60 = vadd.f32 %v721_v52, %v720_v44  ;;  %v747_v9 = vadd.f32 %v746_v56, %v745_v0  ;;  %v1254_v56 = vld [vmem:[%s1775_s9 + $0x8] sm:$0xff]   ;;  %v1256_v0 = vld [vmem:[%s1775_s9 + $0x18] sm:$0xff]  }
  0x6d   : > { %539 = vperm.xlu2 %1389, %v500_v24   ;;  %v715_v1 = vadd.f32 %v714_v57, %v713_v49  ;;  %v740_v6 = vadd.f32 %v739_v62, %v738_v54  ;;  %v731_v7 = vadd.f32 %v730_v63, %v729_v55  ;;  %v755_v18 = vsel %vm690_vm1, %v510_v14, 0.0 }
  0x6e   : > { %529 = vperm.xlu1 %1388, %v498_v25   ;;  %v706_v2 = vadd.f32 %v705_v58, %v704_v50  ;;  %519 = vperm.xlu0 %1387, %v496_v26   ;;  %v697_v3 = vadd.f32 %v696_v59, %v695_v51  ;;  %v723_v4 = vrot.slane %v722_v60, 2  ;;  %v748_v17 = vrot.slane %v747_v9, 4  ;;  %v689_v50 = vld [vmem:[#allocation3] sm:$0xff] }
  0x6f   : > { %v716_v10 = vrot.slane %v715_v1, 1  ;;  %v741_v15 = vrot.slane %v740_v6, 2  ;;  %v732_v16 = vrot.slane %v731_v7, 2  ;;  %v756_v26 = vadd.f32 %v755_v18, %v754_v8 }
  0x70   : > { %v707_v11 = vrot.slane %v706_v2, 1  ;;  %v698_v12 = vrot.slane %v697_v3, 1  ;;  %v724_v13 = vadd.f32 %v723_v4, %v722_v60  ;;  %v749_v25 = vadd.f32 %v748_v17, %v747_v9  ;;  %v1223_v60 = vld [vmem:[%s1775_s9] sm:$0xff]  }
  0x71   : > { %v717_v19 = vadd.f32 %v716_v10, %v715_v1  ;;  %v742_v23 = vadd.f32 %v741_v15, %v740_v6  ;;  %v733_v24 = vadd.f32 %v732_v16, %v731_v7  ;;  %vm674_vm3 = vcmask 1042434   ;;  %v1255_v1 = vld [vmem:[%s1775_s9 + $0x10] sm:$0xff]  }
  0x72   : > { %v708_v20 = vadd.f32 %v707_v11, %v706_v2  ;;  %v699_v21 = vadd.f32 %v698_v12, %v697_v3  ;;  %v725_v22 = vrot.slane %v724_v13, 1  ;;  %vm676_vm4 = vcmask 1043459   ;;  %v1257_v12 = vld [vmem:[%s1775_s9 + $0x20] sm:$0xff]  }
  0x73   : > { %v743_v31 = vrot.slane %v742_v23, 1  ;;  %v734_v32 = vrot.slane %v733_v24, 1  ;;  %v750_v33 = vrot.slane %v749_v25, 2  ;;  %v757_v38 = vrot.slane %v756_v26, 4 }
  0x74   : > { %v771_v27 = vsel %vm672_vm2, %v708_v20, %v699_v21  ;;  %v726_v28 = vadd.f32 %v725_v22, %v724_v13  ;;  %vm678_vm5 = vcmask 1044484   ;;  %vm680_vm6 = vcmask 1045509   ;;  %v1258_v13 = vld [vmem:[%s1775_s9 + $0x28] sm:$0xff]  }
  0x75   : > { %v772_v29 = vsel %vm674_vm3, %v717_v19, %v771_v27  ;;  %554 = vperm.xlu2 %1389, %v1806_v30   ;;  %v735_v39 = vadd.f32 %v734_v32, %v733_v24  ;;  %v751_v40 = vadd.f32 %v750_v33, %v749_v25  ;;  %v744_v41 = vadd.f32 %v743_v31, %v742_v23 }
  0x76   : > { %549 = vperm.xlu1 %1388, %v1809_v34   ;;  %544 = vperm.xlu0 %1387, %v1812_v35   ;;  %v773_v37 = vsel %vm676_vm4, %v726_v28, %v772_v29  ;;  %v758_v42 = vadd.f32 %v757_v38, %v756_v26  ;;  %vm682_vm7 = vcmask 1046534   ;;  %vm684_vm8 = vcmask 1047559  }
  0x77   : > { %v774_v43 = vsel %vm678_vm5, %v735_v39, %v773_v37  ;;  %v752_v44 = vrot.slane %v751_v40, 1  ;;  %v1228_v59 = vunpack.c.l.bf16 %v1254_v56  ;;  %v1229_v62 = vunpack.c.h.bf16 %v1254_v56 }
  0x78   : > { %v759_v47 = vrot.slane %v758_v42, 2  ;;  %v775_v48 = vsel %vm680_vm6, %v744_v41, %v774_v43  ;;  %v1225_v63 = vunpack.c.h.bf16 %v1223_v60  ;;  %v1236_v6 = vunpack.c.l.bf16 %v1256_v0 }
  0x79   : > { %v753_v30 = vadd.f32 %v752_v44, %v751_v40  ;;  %v1232_v7 = vunpack.c.l.bf16 %v1255_v1  ;;  %v1233_v8 = vunpack.c.h.bf16 %v1255_v1  ;;  %v1240_v20 = vunpack.c.l.bf16 %v1257_v12  ;;  %v1259_v40 = vld [vmem:[%s1775_s9 + $0x30] sm:$0xff]  }
  0x7a   : > { %v760_v49 = vadd.f32 %v759_v47, %v758_v42  ;;  %v1245_v21 = vunpack.c.h.bf16 %v1258_v13  ;;  %v1244_v22 = vunpack.c.l.bf16 %v1258_v13  ;;  %v1241_v23 = vunpack.c.h.bf16 %v1257_v12 }
  0x7b   : > { %v776_v35 = vsel %vm682_vm7, %v753_v30, %v775_v48  ;;  %v1249_v48 = vunpack.c.h.bf16 %v1259_v40 }
  0x7c   : > { %v761_v34 = vrot.slane %v760_v49, 1 }
  0x7d   : > { %569 = vperm.xlu2 %1389, %v1815_v36  }
  0x7e   : > { %564 = vperm.xlu1 %1388, %v1826_v45   ;;  %559 = vperm.xlu0 %1387, %v1829_v46   ;;  %v762_v51 = vadd.f32 %v761_v34, %v760_v49  ;;  %v1248_v34 = vunpack.c.l.bf16 %v1259_v40 }
  0x80   : > { %v777_v52 = vsel %vm684_vm8, %v762_v51, %v776_v35 }
  0x81   : > { %v779_v54 = vadd.f32 %v777_v52, %v689_v50 }
  0x83   : > { %780 = vst.msk [vmem:[#allocation3] sm:$0xff] %vm690_vm1, %v779_v54 }
  0x85   : > { %584 = vperm.xlu2 %1389, %v509_v5   ;;  %v1237_v5 = vunpack.c.h.bf16 %v1256_v0 }
  0x86   : > { %579 = vperm.xlu1 %1388, %v1836_v53   ;;  %574 = vperm.xlu0 %1387, %v1841_v61   ;;  %v1224_v53 = vunpack.c.l.bf16 %v1223_v60 }
  0x8e   : > { %589 = vperm.xlu0 %1387, %v510_v14  }
  0xbf   : > { %v535_v36 = vpop.permute.xlu2 %534 }
  0xc0   : > { %v596_v18 = vmul.f32 %v1232_v7, %v535_v36 }
  0xc7   : > { %v540_v55 = vpop.permute.xlu2 %539 }
  0xc8   : > { %v597_v19 = vmul.f32 %v1233_v8, %v540_v55  ;;  %v1260_v55 = vld [vmem:[%s1775_s9 + $0x38] sm:$0xff]  }
  0xc9   : > { %v1252_v1 = vunpack.c.l.bf16 %v1260_v55 }
  0xca   : > { %v622_v28 = vadd.f32 %v597_v19, %v596_v18 }
  0xcc   : > { %v623_v47 = vrot.slane %v622_v28, 4 }
  0xce   : > { %v624_v52 = vadd.f32 %v623_v47, %v622_v28 }
  0xcf   : > { %v555_v2 = vpop.permute.xlu2 %554 }
  0xd0   : > { %v600_v32 = vmul.f32 %v1240_v20, %v555_v2  ;;  %v1253_v2 = vunpack.c.h.bf16 %v1260_v55 }
  0xd7   : > { %v570_v25 = vpop.permute.xlu2 %569 }
  0xd8   : > { %v525_v45 = vpop.permute.xlu1 %524  ;;  %v515_v46 = vpop.permute.xlu0 %514  ;;  %v603_v33 = vmul.f32 %v1245_v21, %v570_v25 }
  0xd9   : > { %v594_v3 = vmul.f32 %v1228_v59, %v525_v45  ;;  %v592_v11 = vmul.f32 %v1224_v53, %v515_v46 }
  0xdf   : > { %v585_v53 = vpop.permute.xlu2 %584 }
  0xe0   : > { %v530_v57 = vpop.permute.xlu1 %529  ;;  %v520_v58 = vpop.permute.xlu0 %519 }
  0xe1   : > { %v595_v61 = vmul.f32 %v1229_v62, %v530_v57  ;;  %v593_v4 = vmul.f32 %v1225_v63, %v520_v58  ;;  %v625_v62 = vrot.slane %v624_v52, 2 }
  0xe3   : > { %v615_v14 = vadd.f32 %v595_v61, %v594_v3  ;;  %v608_v15 = vadd.f32 %v593_v4, %v592_v11  ;;  %v626_v7 = vadd.f32 %v625_v62, %v624_v52  ;;  %v606_v11 = vmul.f32 %v1252_v1, %v585_v53 }
  0xe5   : > { %v616_v24 = vrot.slane %v615_v14, 4  ;;  %v609_v26 = vrot.slane %v608_v15, 4  ;;  %v627_v19 = vrot.slane %v626_v7, 1 }
  0xe7   : > { %v617_v39 = vadd.f32 %v616_v24, %v615_v14  ;;  %v610_v41 = vadd.f32 %v609_v26, %v608_v15 }
  0xe8   : > { %v550_v9 = vpop.permute.xlu1 %549  ;;  %v545_v10 = vpop.permute.xlu0 %544 }
  0xe9   : > { %v599_v16 = vmul.f32 %v1237_v5, %v550_v9  ;;  %v598_v17 = vmul.f32 %v1236_v6, %v545_v10  ;;  %v618_v49 = vrot.slane %v617_v39, 2  ;;  %v611_v35 = vrot.slane %v610_v41, 2 }
  0xeb   : > { %v629_v27 = vadd.f32 %v599_v16, %v598_v17  ;;  %v619_v56 = vadd.f32 %v618_v49, %v617_v39  ;;  %v612_v58 = vadd.f32 %v611_v35, %v610_v41 }
  0xed   : > { %v630_v42 = vrot.slane %v629_v27, 4  ;;  %v620_v3 = vrot.slane %v619_v56, 1  ;;  %v613_v4 = vrot.slane %v612_v58, 1 }
  0xef   : > { %v631_v50 = vadd.f32 %v630_v42, %v629_v27  ;;  %v621_v13 = vadd.f32 %v620_v3, %v619_v56  ;;  %v614_v15 = vadd.f32 %v613_v4, %v612_v58  ;;  %v628_v27 = vadd.f32 %v627_v19, %v626_v7 }
  0xf0   : > { %v565_v29 = vpop.permute.xlu1 %564  ;;  %v560_v31 = vpop.permute.xlu0 %559 }
  0xf1   : > { %v602_v37 = vmul.f32 %v1244_v22, %v565_v29  ;;  %v601_v38 = vmul.f32 %v1241_v23, %v560_v31  ;;  %v632_v59 = vrot.slane %v631_v50, 2  ;;  %v673_v23 = vsel %vm672_vm2, %v621_v13, %v614_v15 }
  0xf3   : > { %v643_v43 = vadd.f32 %v603_v33, %v602_v37  ;;  %v636_v44 = vadd.f32 %v601_v38, %v600_v32  ;;  %v633_v5 = vadd.f32 %v632_v59, %v631_v50  ;;  %v675_v32 = vsel %vm674_vm3, %v628_v27, %v673_v23 }
  0xf5   : > { %v637_v30 = vrot.slane %v636_v44, 4  ;;  %v644_v51 = vrot.slane %v643_v43, 4  ;;  %v634_v16 = vrot.slane %v633_v5, 1 }
  0xf7   : > { %v638_v54 = vadd.f32 %v637_v30, %v636_v44  ;;  %v645_v60 = vadd.f32 %v644_v51, %v643_v43  ;;  %v635_v24 = vadd.f32 %v634_v16, %v633_v5  ;;  %v511_v43 = vld [vmem:[#allocation2] sm:$0xff] }
  0xf8   : > { %v580_v36 = vpop.permute.xlu1 %579  ;;  %v575_v45 = vpop.permute.xlu0 %574 }
  0xf9   : > { %v605_v46 = vmul.f32 %v1249_v48, %v580_v36  ;;  %v604_v57 = vmul.f32 %v1248_v34, %v575_v45  ;;  %v639_v63 = vrot.slane %v638_v54, 2  ;;  %v646_v6 = vrot.slane %v645_v60, 2 }
  0xfa   : > { %v677_v33 = vsel %vm676_vm4, %v635_v24, %v675_v32 }
  0xfb   : > { %v650_v0 = vadd.f32 %v605_v46, %v604_v57  ;;  %v640_v8 = vadd.f32 %v639_v63, %v638_v54  ;;  %v647_v17 = vadd.f32 %v646_v6, %v645_v60 }
  0xfd   : > { %v651_v61 = vrot.slane %v650_v0, 4  ;;  %v641_v20 = vrot.slane %v640_v8, 1  ;;  %v648_v25 = vrot.slane %v647_v17, 1 }
  0xff   : > { %v652_v9 = vadd.f32 %v651_v61, %v650_v0  ;;  %v642_v28 = vadd.f32 %v641_v20, %v640_v8  ;;  %v649_v37 = vadd.f32 %v648_v25, %v647_v17 }
 0x100   : > { %v590_v10 = vpop.permute.xlu0 %589 }
 0x101   : > { %v607_v12 = vmul.f32 %v1253_v2, %v590_v10  ;;  %v653_v14 = vrot.slane %v652_v9, 2  ;;  %v679_v39 = vsel %vm678_vm5, %v642_v28, %v677_v33 }
 0x102   : > { %v681_v42 = vsel %vm680_vm6, %v649_v37, %v679_v39 }
 0x103   : > { %v657_v18 = vadd.f32 %v607_v12, %v606_v11  ;;  %v654_v21 = vadd.f32 %v653_v14, %v652_v9 }
 0x105   : > { %v658_v22 = vrot.slane %v657_v18, 4  ;;  %v655_v29 = vrot.slane %v654_v21, 1 }
 0x107   : > { %v659_v26 = vadd.f32 %v658_v22, %v657_v18  ;;  %v656_v40 = vadd.f32 %v655_v29, %v654_v21 }
 0x109   : > { %v660_v31 = vrot.slane %v659_v26, 2  ;;  %v683_v47 = vsel %vm682_vm7, %v656_v40, %v681_v42 }
 0x10b   : > { %v661_v38 = vadd.f32 %v660_v31, %v659_v26 }
 0x10d   : > { %v662_v41 = vrot.slane %v661_v38, 1 }
 0x10f   : > { %v663_v44 = vadd.f32 %v662_v41, %v661_v38 }
 0x110   : > { %784 = sbr.rel (%p1213_p6) target bundleno = 824 (0x338), region = 98 }
 0x111   : > { %v685_v30 = vsel %vm684_vm8, %v663_v44, %v683_v47 }
 0x112   : > { %v687_v48 = vadd.f32 %v685_v30, %v511_v43 }
 0x114   : > { %688 = vst [vmem:[#allocation2] sm:$0xff] %v687_v48 }
 0x115   : > { %v785_v49 = vld [vmem:[#allocation3] sm:$0xff]  ;;  %v838_v34 = vld [vmem:[#allocation8 + $0xf0] sm:$0xff]  ;;  %v1564_v50 = vmov 0   ;;  %v836_v52 = vld [vmem:[#allocation8 + $0xe0] sm:$0xff] }
 0x116   : > { %v839_v35 = vld [vmem:[#allocation8 + $0xf8] sm:$0xff]  ;;  %1390 = vset.pattern.permute.xlu0 %v1564_v50  ;;  %v786_v51 = vmax.f32 %v785_v49, 1e-09  ;;  %846 = vmatpush.msra.mxu0 %v838_v34  ;;  %v837_v54 = vld [vmem:[#allocation8 + $0xe8] sm:$0xff]  ;;  %v834_v36 = vld [vmem:[#allocation8 + $0xd0] sm:$0xff] }
 0x117   : > { %866 = vmatpush.msra.mxu1 %v839_v35  ;;  %v835_v45 = vld [vmem:[#allocation8 + $0xd8] sm:$0xff]  ;;  %v832_v46 = vld [vmem:[#allocation8 + $0xc0] sm:$0xff]  ;;  %v833_v55 = vld [vmem:[#allocation8 + $0xc8] sm:$0xff] }
 0x118   : > { %1391 = vrcp.f32 %v786_v51  ;;  %847 = vmatpush.msra.mxu0 %v836_v52  ;;  %v830_v56 = vld [vmem:[#allocation8 + $0xb0] sm:$0xff]  ;;  %v831_v57 = vld [vmem:[#allocation8 + $0xb8] sm:$0xff]  ;;  %v828_v58 = vld [vmem:[#allocation8 + $0xa0] sm:$0xff]  ;;  %v799_v0 = vand.u32 2147483648, %v786_v51  ;;  %vm793_vm9 = vweird.f32 %v786_v51  ;;  %v797_v53 = vand.u32 2147483647, %v786_v51 }
 0x119   : > { %867 = vmatpush.msra.mxu1 %v837_v54  ;;  %v829_v60 = vld [vmem:[#allocation8 + $0xa8] sm:$0xff]  ;;  %v826_v63 = vld [vmem:[#allocation8 + $0x90] sm:$0xff]  ;;  %v827_v1 = vld [vmem:[#allocation8 + $0x98] sm:$0xff] }
 0x11a   : > { %848 = vmatpush.msra.mxu0 %v834_v36  ;;  %v824_v3 = vld [vmem:[#allocation8 + $0x80] sm:$0xff]  ;;  %v825_v61 = vld [vmem:[#allocation8 + $0x88] sm:$0xff]  ;;  %v822_v5 = vld [vmem:[#allocation8 + $0x70] sm:$0xff]  ;;  %v800_v6 = vor.u32 1.1754944e-38, %v799_v0  ;;  %vm798_vm12 = vcmp.eq.f32.partialorder %v797_v53, 8.507059e+37 }
 0x11b   : > { %868 = vmatpush.msra.mxu1 %v835_v45  ;;  %v823_v7 = vld [vmem:[#allocation8 + $0x78] sm:$0xff]  ;;  %v820_v9 = vld [vmem:[#allocation8 + $0x60] sm:$0xff]  ;;  %v821_v10 = vld [vmem:[#allocation8 + $0x68] sm:$0xff] }
 0x11c   : > { %849 = vmatpush.msra.mxu0 %v832_v46  ;;  %v818_v12 = vld [vmem:[#allocation8 + $0x50] sm:$0xff]  ;;  %v819_v14 = vld [vmem:[#allocation8 + $0x58] sm:$0xff]  ;;  %v816_v15 = vld [vmem:[#allocation8 + $0x40] sm:$0xff] }
 0x11d   : > { %869 = vmatpush.msra.mxu1 %v833_v55  ;;  %v817_v16 = vld [vmem:[#allocation8 + $0x48] sm:$0xff]  ;;  %v814_v17 = vld [vmem:[#allocation8 + $0x30] sm:$0xff]  ;;  %v815_v18 = vld [vmem:[#allocation8 + $0x38] sm:$0xff] }
 0x11e   : > { %v1392_v59 = vpop.eup %1391  ;;  %850 = vmatpush.msra.mxu0 %v830_v56  ;;  %v812_v19 = vld [vmem:[#allocation8 + $0x20] sm:$0xff]  ;;  %v813_v20 = vld [vmem:[#allocation8 + $0x28] sm:$0xff]  ;;  %v810_v21 = vld [vmem:[#allocation8 + $0x10] sm:$0xff] }
 0x11f   : > { %v789_v62 = vmul.f32 %v1392_v59, %v786_v51  ;;  %870 = vmatpush.msra.mxu1 %v831_v57  ;;  %vm794_vm10 = vweird.f32 %v1392_v59  ;;  %v811_v22 = vld [vmem:[#allocation8 + $0x18] sm:$0xff]  ;;  %v808_v23 = vld [vmem:[#allocation8] sm:$0xff]  ;;  %v809_v24 = vld [vmem:[#allocation8 + $0x8] sm:$0xff] }
 0x120   : > { %851 = vmatpush.msra.mxu0 %v828_v58  ;;  %vm795_vm11 = vmor %vm793_vm9, %vm794_vm10  ;;  %v918_v25 = vld [vmem:[%s2139_s4 + $0xf0] sm:$0xff]  ;;  %v919_v27 = vld [vmem:[%s2139_s4 + $0xf8] sm:$0xff] }
 0x121   : > { %v790_v2 = vsub.f32 1.0, %v789_v62  ;;  %871 = vmatpush.msra.mxu1 %v829_v60  ;;  %v950_v26 = vld [vmem:[%s2139_s4 + $0x1f0] sm:$0xff]  ;;  %958 = vmatpush.msra.mxu2 %v918_v25  ;;  %v951_v28 = vld [vmem:[%s2139_s4 + $0x1f8] sm:$0xff]  ;;  %v916_v29 = vld [vmem:[%s2139_s4 + $0xe0] sm:$0xff] }
 0x122   : > { %852 = vmatpush.msra.mxu0 %v826_v63  ;;  %978 = vmatpush.msra.mxu3 %v950_v26  ;;  %v948_v31 = vld [vmem:[%s2139_s4 + $0x1e0] sm:$0xff]  ;;  %v917_v32 = vld [vmem:[%s2139_s4 + $0xe8] sm:$0xff]  ;;  %v914_v37 = vld [vmem:[%s2139_s4 + $0xd0] sm:$0xff] }
 0x123   : > { %v791_v4 = vmul.f32 %v1392_v59, %v790_v2  ;;  %872 = vmatpush.msra.mxu1 %v827_v1  ;;  %v949_v33 = vld [vmem:[%s2139_s4 + $0x1e8] sm:$0xff]  ;;  %959 = vmatpush.msra.mxu2 %v916_v29  ;;  %v946_v38 = vld [vmem:[%s2139_s4 + $0x1d0] sm:$0xff]  ;;  %v915_v39 = vld [vmem:[%s2139_s4 + $0xd8] sm:$0xff] }
 0x124   : > { %853 = vmatpush.msra.mxu0 %v824_v3  ;;  %979 = vmatpush.msra.mxu3 %v948_v31  ;;  %v947_v40 = vld [vmem:[%s2139_s4 + $0x1d8] sm:$0xff]  ;;  %v912_v41 = vld [vmem:[%s2139_s4 + $0xc0] sm:$0xff]  ;;  %v913_v43 = vld [vmem:[%s2139_s4 + $0xc8] sm:$0xff] }
 0x125   : > { %v792_v8 = vadd.f32 %v1392_v59, %v791_v4  ;;  %873 = vmatpush.msra.mxu1 %v825_v61  ;;  %v944_v42 = vld [vmem:[%s2139_s4 + $0x1c0] sm:$0xff]  ;;  %960 = vmatpush.msra.mxu2 %v914_v37  ;;  %v945_v44 = vld [vmem:[%s2139_s4 + $0x1c8] sm:$0xff]  ;;  %v910_v47 = vld [vmem:[%s2139_s4 + $0xb0] sm:$0xff] }
 0x126   : > { %854 = vmatpush.msra.mxu0 %v822_v5  ;;  %980 = vmatpush.msra.mxu3 %v946_v38  ;;  %v942_v30 = vld [vmem:[%s2139_s4 + $0x1b0] sm:$0xff]  ;;  %v911_v48 = vld [vmem:[%s2139_s4 + $0xb8] sm:$0xff]  ;;  %v908_v34 = vld [vmem:[%s2139_s4 + $0xa0] sm:$0xff] }
 0x127   : > { %v796_v11 = vsel %vm795_vm11, %v1392_v59, %v792_v8  ;;  %874 = vmatpush.msra.mxu1 %v823_v7  ;;  %961 = vmatpush.msra.mxu2 %v912_v41  ;;  %v943_v49 = vld [vmem:[%s2139_s4 + $0x1b8] sm:$0xff]  ;;  %v940_v35 = vld [vmem:[%s2139_s4 + $0x1a0] sm:$0xff]  ;;  %v909_v50 = vld [vmem:[%s2139_s4 + $0xa8] sm:$0xff] }
 0x128   : > { %v801_v13 = vsel %vm798_vm12, %v800_v6, %v796_v11  ;;  %855 = vmatpush.msra.mxu0 %v820_v9  ;;  %981 = vmatpush.msra.mxu3 %v944_v42  ;;  %v941_v51 = vld [vmem:[%s2139_s4 + $0x1a8] sm:$0xff]  ;;  %v906_v52 = vld [vmem:[%s2139_s4 + $0x90] sm:$0xff]  ;;  %v907_v36 = vld [vmem:[%s2139_s4 + $0x98] sm:$0xff] }
 0x129   : > { %804 = vperm.xlu0 %1390, %v801_v13   ;;  %875 = vmatpush.msra.mxu1 %v821_v10  ;;  %v938_v54 = vld [vmem:[%s2139_s4 + $0x190] sm:$0xff]  ;;  %v939_v45 = vld [vmem:[%s2139_s4 + $0x198] sm:$0xff]  ;;  %v904_v46 = vld [vmem:[%s2139_s4 + $0x80] sm:$0xff] }
 0x12a   : > { %856 = vmatpush.msra.mxu0 %v818_v12  ;;  %962 = vmatpush.msra.mxu2 %v910_v47  ;;  %v936_v55 = vld [vmem:[%s2139_s4 + $0x180] sm:$0xff]  ;;  %v905_v56 = vld [vmem:[%s2139_s4 + $0x88] sm:$0xff]  ;;  %v902_v58 = vld [vmem:[%s2139_s4 + $0x70] sm:$0xff] }
 0x12b   : > { %876 = vmatpush.msra.mxu1 %v819_v14  ;;  %982 = vmatpush.msra.mxu3 %v942_v30  ;;  %v937_v57 = vld [vmem:[%s2139_s4 + $0x188] sm:$0xff]  ;;  %v934_v59 = vld [vmem:[%s2139_s4 + $0x170] sm:$0xff]  ;;  %v903_v60 = vld [vmem:[%s2139_s4 + $0x78] sm:$0xff] }
 0x12c   : > { %857 = vmatpush.msra.mxu0 %v816_v15  ;;  %963 = vmatpush.msra.mxu2 %v908_v34  ;;  %v935_v62 = vld [vmem:[%s2139_s4 + $0x178] sm:$0xff]  ;;  %v900_v63 = vld [vmem:[%s2139_s4 + $0x60] sm:$0xff]  ;;  %v901_v1 = vld [vmem:[%s2139_s4 + $0x68] sm:$0xff] }
 0x12d   : > { %877 = vmatpush.msra.mxu1 %v817_v16  ;;  %983 = vmatpush.msra.mxu3 %v940_v35  ;;  %v932_v0 = vld [vmem:[%s2139_s4 + $0x160] sm:$0xff]  ;;  %v933_v2 = vld [vmem:[%s2139_s4 + $0x168] sm:$0xff]  ;;  %v898_v53 = vld [vmem:[%s2139_s4 + $0x50] sm:$0xff] }
 0x12e   : > { %858 = vmatpush.msra.mxu0 %v814_v17  ;;  %964 = vmatpush.msra.mxu2 %v906_v52  ;;  %v930_v3 = vld [vmem:[%s2139_s4 + $0x150] sm:$0xff]  ;;  %v899_v61 = vld [vmem:[%s2139_s4 + $0x58] sm:$0xff]  ;;  %v896_v5 = vld [vmem:[%s2139_s4 + $0x40] sm:$0xff] }
 0x12f   : > { %878 = vmatpush.msra.mxu1 %v815_v18  ;;  %984 = vmatpush.msra.mxu3 %v938_v54  ;;  %v931_v4 = vld [vmem:[%s2139_s4 + $0x158] sm:$0xff]  ;;  %v928_v6 = vld [vmem:[%s2139_s4 + $0x140] sm:$0xff]  ;;  %v897_v7 = vld [vmem:[%s2139_s4 + $0x48] sm:$0xff] }
 0x130   : > { %859 = vmatpush.msra.mxu0 %v812_v19  ;;  %965 = vmatpush.msra.mxu2 %v904_v46  ;;  %v929_v8 = vld [vmem:[%s2139_s4 + $0x148] sm:$0xff]  ;;  %v894_v9 = vld [vmem:[%s2139_s4 + $0x30] sm:$0xff]  ;;  %v895_v11 = vld [vmem:[%s2139_s4 + $0x38] sm:$0xff] }
 0x131   : > { %879 = vmatpush.msra.mxu1 %v813_v20  ;;  %985 = vmatpush.msra.mxu3 %v936_v55  ;;  %v926_v10 = vld [vmem:[%s2139_s4 + $0x130] sm:$0xff]  ;;  %v927_v12 = vld [vmem:[%s2139_s4 + $0x138] sm:$0xff]  ;;  %v787_v13 = vld [vmem:[#allocation2] sm:$0xff] }
 0x132   : > { %860 = vmatpush.msra.mxu0 %v810_v21  ;;  %966 = vmatpush.msra.mxu2 %v902_v58  ;;  %v892_v16 = vld [vmem:[%s2139_s4 + $0x20] sm:$0xff]  ;;  %v893_v18 = vld [vmem:[%s2139_s4 + $0x28] sm:$0xff]  ;;  %v890_v20 = vld [vmem:[%s2139_s4 + $0x10] sm:$0xff] }
 0x133   : > { %880 = vmatpush.msra.mxu1 %v811_v22  ;;  %986 = vmatpush.msra.mxu3 %v934_v59  ;;  %v924_v17 = vld [vmem:[%s2139_s4 + $0x120] sm:$0xff]  ;;  %v925_v19 = vld [vmem:[%s2139_s4 + $0x128] sm:$0xff]  ;;  %v922_v21 = vld [vmem:[%s2139_s4 + $0x110] sm:$0xff] }
 0x134   : > { %861 = vmatpush.msra.mxu0 %v808_v23  ;;  %967 = vmatpush.msra.mxu2 %v900_v63  ;;  %v891_v22 = vld [vmem:[%s2139_s4 + $0x18] sm:$0xff]  ;;  %v920_v25 = vld [vmem:[%s2139_s4 + $0x100] sm:$0xff]  ;;  %v889_v26 = vld [vmem:[%s2139_s4 + $0x8] sm:$0xff] }
 0x135   : > { %881 = vmatpush.msra.mxu1 %v809_v24  ;;  %987 = vmatpush.msra.mxu3 %v932_v0  ;;  %v923_v23 = vld [vmem:[%s2139_s4 + $0x118] sm:$0xff]  ;;  %v888_v24 = vld [vmem:[%s2139_s4] sm:$0xff] }
 0x136   : > { %998 = vmatpush.msrb.mxu0 %v919_v27  ;;  %968 = vmatpush.msra.mxu2 %v898_v53  ;;  %v921_v27 = vld [vmem:[%s2139_s4 + $0x108] sm:$0xff]  ;;  %v952_v41 = vld [vmem:[%s2140_s5] sm:$0x3] }
 0x137   : > { %1018 = vmatpush.msrb.mxu1 %v951_v28  ;;  %988 = vmatpush.msra.mxu3 %v930_v3  ;;  %v840_v28 = vld [vmem:[%s2138_s3] sm:$0x3]  ;;  %v955_v42 = vperm.slane %v952_v41, 1  ;;  %v954_v47 = vperm.slane %v952_v41, 0 }
 0x138   : > { %999 = vmatpush.msrb.mxu0 %v917_v32  ;;  %969 = vmatpush.msra.mxu2 %v896_v5  ;;  %v842_v29 = vperm.slane %v840_v28, 0  ;;  %v843_v31 = vperm.slane %v840_v28, 1 }
 0x139   : > { %1019 = vmatpush.msrb.mxu1 %v949_v33  ;;  %989 = vmatpush.msra.mxu3 %v928_v6 }
 0x13a   : > { %1000 = vmatpush.msrb.mxu0 %v915_v39  ;;  %970 = vmatpush.msra.mxu2 %v894_v9 }
 0x13b   : > { %1020 = vmatpush.msrb.mxu1 %v947_v40  ;;  %990 = vmatpush.msra.mxu3 %v926_v10 }
 0x13c   : > { %1001 = vmatpush.msrb.mxu0 %v913_v43  ;;  %971 = vmatpush.msra.mxu2 %v892_v16 }
 0x13d   : > { %1021 = vmatpush.msrb.mxu1 %v945_v44  ;;  %991 = vmatpush.msra.mxu3 %v924_v17 }
 0x13e   : > { %1002 = vmatpush.msrb.mxu0 %v911_v48  ;;  %972 = vmatpush.msra.mxu2 %v890_v20 }
 0x13f   : > { %1022 = vmatpush.msrb.mxu1 %v943_v49  ;;  %992 = vmatpush.msra.mxu3 %v922_v21 }
 0x140   : > { %1003 = vmatpush.msrb.mxu0 %v909_v50  ;;  %973 = vmatpush.msra.mxu2 %v888_v24 }
 0x141   : > { %1023 = vmatpush.msrb.mxu1 %v941_v51  ;;  %993 = vmatpush.msra.mxu3 %v920_v25 }
 0x142   : > { %1004 = vmatpush.msrb.mxu0 %v907_v36 }
 0x143   : > { %1024 = vmatpush.msrb.mxu1 %v939_v45 }
 0x144   : > { %1005 = vmatpush.msrb.mxu0 %v905_v56 }
 0x145   : > { %1025 = vmatpush.msrb.mxu1 %v937_v57 }
 0x146   : > { %1006 = vmatpush.msrb.mxu0 %v903_v60 }
 0x147   : > { %1026 = vmatpush.msrb.mxu1 %v935_v62 }
 0x148   : > { %1007 = vmatpush.msrb.mxu0 %v901_v1 }
 0x149   : > { %1027 = vmatpush.msrb.mxu1 %v933_v2 }
 0x14a   : > { %1008 = vmatpush.msrb.mxu0 %v899_v61 }
 0x14b   : > { %1028 = vmatpush.msrb.mxu1 %v931_v4 }
 0x14c   : > { %1009 = vmatpush.msrb.mxu0 %v897_v7 }
 0x14d   : > { %1029 = vmatpush.msrb.mxu1 %v929_v8 }
 0x14e   : > { %1010 = vmatpush.msrb.mxu0 %v895_v11 }
 0x14f   : > { %1030 = vmatpush.msrb.mxu1 %v927_v12 }
 0x150   : > { %1011 = vmatpush.msrb.mxu0 %v893_v18 }
 0x151   : > { %1031 = vmatpush.msrb.mxu1 %v925_v19 }
 0x152   : > { %1012 = vmatpush.msrb.mxu0 %v891_v22 }
 0x153   : > { %1032 = vmatpush.msrb.mxu1 %v923_v23 }
 0x154   : > { %1013 = vmatpush.msrb.mxu0 %v889_v26 }
 0x155   : > { %1033 = vmatpush.msrb.mxu1 %v921_v27 }
 0x19b   : > { %v805_v14 = vpop.permute.xlu0 %804 }
 0x19c   : > { %v807_v15 = vmul.f32 %v805_v14, %v787_v13 }
 0x19e   : > { %862 = vmatmul.f32.vlgmr.msra.gmra.mxu0 %v807_v15  ;;  %882 = vmatmul.f32.vlgmr.msra.gmra.mxu1 %v807_v15 }
 0x21b   : > { %v863_v32 = vpop.f32.mrf.mxu0  ;;  %v883_v33 = vpop.f32.mrf.mxu1 }
 0x21c   : > { %v864_v37 = vadd.f32 %v863_v32, %v842_v29  ;;  %v884_v38 = vadd.f32 %v883_v33, %v843_v31 }
 0x21e   : > { %v886_v39 = vmax.f32 %v864_v37, 0.0  ;;  %v887_v40 = vmax.f32 %v884_v38, 0.0 }
 0x220   : > { %974 = vmatmul.f32.vlgmr.msra.gmra.mxu2 %v886_v39  ;;  %994 = vmatmul.f32.vlgmr.msra.gmra.mxu3 %v887_v40 }
 0x221   : > { %1014 = vmatmul.f32.vlgmr.msrb.gmra.mxu0 %v886_v39  ;;  %1034 = vmatmul.f32.vlgmr.msrb.gmra.mxu1 %v887_v40 }
 0x29e   : > { %v1015_v43 = vpop.f32.mrf.mxu0  ;;  %v1035_v30 = vpop.f32.mrf.mxu1 }
 0x29f   : > { %v1016_v44 = vadd.f32 %v1015_v43, %v955_v42 }
 0x2a1   : > { %v1036_v49 = vadd.f32 %v1035_v30, %v1016_v44 }
 0x2a3   : > { %v975_v48 = vpop.f32.mrf.mxu2  ;;  %v995_v35 = vpop.f32.mrf.mxu3  ;;  %v1039_v51 = vmul.f32 %v1036_v49, %v1036_v49 }
 0x2a4   : > { %v976_v34 = vadd.f32 %v975_v48, %v954_v47 }
 0x2a6   : > { %v996_v50 = vadd.f32 %v995_v35, %v976_v34 }
 0x2a8   : > { %v1038_v52 = vmul.f32 %v996_v50, %v996_v50 }
 0x2aa   : > { %v1040_v54 = vadd.f32 %v1039_v51, %v1038_v52 }
 0x2ac   : > { %1041 = vadd.xlane.f32.xlu0 %v1040_v54 }
 0x31f   : > { %v1042_v36 = vpop.xlane.xlu0 %1041 }
 0x320   : > { %v1043_v45 = vmax.f32 %v1042_v36, 1e-24 }
 0x322   : > { %1393 = vrsqrt.f32 %v1043_v45  ;;  %vm1050_vm14 = vweird.f32 %v1043_v45 }
 0x328   : > { %v1394_v46 = vpop.eup %1393 }
 0x329   : > { %v1045_v55 = vmul.f32 %v1394_v46, %v1043_v45  ;;  %vm1051_vm13 = vweird.f32 %v1394_v46 }
 0x32a   : > { %vm1052_vm15 = vmor %vm1050_vm14, %vm1051_vm13 }
 0x32b   : > { %v1046_v56 = vmul.f32 %v1394_v46, %v1045_v55 }
 0x32d   : > { %v1047_v57 = vmul.f32 0.5, %v1046_v56 }
 0x32f   : > { %v1048_v58 = vsub.f32 1.5, %v1047_v57 }
 0x331   : > { %v1049_v59 = vmul.f32 %v1394_v46, %v1048_v58 }
 0x333   : > { %v1053_v60 = vsel %vm1052_vm15, %v1394_v46, %v1049_v59 }
 0x334   : > { %v1054_v62 = vmul.f32 %v1053_v60, %v996_v50  ;;  %v1055_v63 = vmul.f32 %v1053_v60, %v1036_v49 }
 0x336   : > { %1056 = vst [vmem:[%s1790_s16] sm:$0xff] %v1054_v62 }
 0x337   : > { %1057 = vst [vmem:[%s1790_s16 + $0x8] sm:$0xff] %v1055_v63 }
 0x338 PF: > { %s1221_s23 = sshll.u32 %s1539_s28, 4  ;;  %s2168_s24 = sld [smem:[#allocation27_spill]] }
 0x339   : > { %s1072_s10 = sshll.u32 %s1790_s16, 4  ;;  %s1059_s9 = scalar_lea.sflag [#allocation6], %s449_s8  ;;  %s1073_s10 = int_to_ptr.vmem [resolvable:$true] %s1072_s10 }
 0x33e   : > { %s2169_s14 = smov %s2168_s24  ;;  %s1070_s0 = scalar_lea.hbm %s2168_s24, %s1221_s23 }
 0x33f   : > { %s1074_s13 = sshll.u32 %s1070_s0, 4  ;;  %s1445_s28 = scalar_lea.hbm %s2169_s14, 32  ;;  %s1075_s13 = int_to_ptr.hbm [resolvable:$true] %s1074_s13 }
 0x340   : > { %s1439_s2 = sshra.s32 %s1075_s13, 4  ;;  %s1440_s2 = int_to_ptr.hbm [resolvable:$true] %s1439_s2 }
 0x341   : > { %s1441_s18 = scalar_lea.hbm %s1440_s2, 16  ;;  %p1446_p0 = scmp.lt.s32.totalorder %s1440_s2, %s2169_s14 }
 0x342   : > { %p1442_p7 = scmp.ne.s32.totalorder %s1440_s2, %s1441_s18  ;;  %p1447_p1 = scmp.lt.s32.totalorder %s1445_s28, %s1441_s18 }
 0x344   : > { %p1443_p11 = pnand %p1442_p7, %p1688_p12  ;;  %p1448_p2 = por %p1447_p1, %p1446_p0 }
 0x346   : > { %p1444_p13 = pneg %p1443_p11 }
 0x348   : > { %p1449_p5 = pnand %p1448_p2, %p1444_p13 }
 0x34a   : > { %1452 = shalt.err (!%p1449_p5)
}
 0x34b   : > { %1274 = dma.vmem_to_hbm [thread:$0]  (%p1688_p12), %s1073_s10, 256, %s1075_s13, %s1059_s9  }
 0x34c PF: > { %p1286_p8 = scmp.ge.s32.totalorder %s1551_s7, 2  ;;  %s1086_s8 = sand.u32 1, %s1511_s21  }
 0x34d   : > { %s1087_s16 = scalar_lea.sflag [#allocation6], %s1086_s8 }
 0x34e   : > { %p1281_p9 = pnand %p1286_p8, %p1702_p4 }
 0x350   : > { %p1282_p10 = pneg %p1281_p9 }
 0x352   : > { %1506 = dma.done.wait (%p1282_p10), %s1087_s16, 256  }
 0x353   : > { %1508 = vsyncadd (%p1282_p10), %s1087_s16, 4294967040  ;;  %s23_s7 = sadd.s32 1, %s1551_s7   ;;  %s2170_s29 = sld [smem:[#allocation17_spill]] }
 0x354   : > { %p20_p3 = scmp.ge.s32.totalorder %s23_s7, 6   ;;  %s2171_s23 = sld [smem:[#allocation23_spill]] }
 0x355   : > { %s2172_s20 = sld [smem:[#allocation18_spill]]  ;;  %s2178_s21 = smov %s1515_s22 }
 0x356   : > { %s2173_s26 = sld [smem:[#allocation24_spill]]  ;;  %s2180_s24 = smov %s1527_s25 }
 0x357   : > { %s2174_s27 = sld [smem:[#allocation19_spill]] }
 0x358   : > { %s2175_s28 = sld [smem:[#allocation20_spill]] }
 0x359   : > { %s2176_s19 = sld [smem:[#allocation21_spill]]  ;;  %s2179_s22 = smov %s2170_s29 }
 0x35a   : > { %s2177_s30 = sld [smem:[#allocation22_spill]] }
 0x35b   : > { %s2181_s25 = smov %s2172_s20  ;;  %22 = sbr.rel (!%p20_p3) target bundleno = 14 (0xe), region = 152 }
 0x35f   : > { %s2182_s29 = smov %s2176_s19 }
 0x360   :  { %1093 = vsyncpa [#allocation5], 1 }
 0x361   :  { %1095 = vsyncpa [#allocation5 + $0x1], 1 }
 0x362   :  { %1096 = vsyncpa [#allocation9], 1 }
 0x363   :  { %1097 = vsyncpa [#allocation6], 1 }
 0x364   :  { %1099 = vsyncpa [#allocation6 + $0x1], 1 }

</bundles_post_ra>
